<compile_context>
chip_gen: v7x
topology: tpu7x:2x2x1
jax: 0.10.0
libtpu: 0.0.40
codegen_flags: <defaults>
</compile_context>

<pallas_src>
import functools
import math

import jax
import jax.numpy as jnp
from jax import lax
from jax.experimental import pallas as pl
from jax.experimental.pallas import tpu as pltpu

# Tile targets; the wrappers fall back to smaller aligned divisors / full extents
# when a dim does not divide the target.
_TM, _TN, _TK = 256, 256, 512       # output-projection tiles (M, N, K)
_TS, _TKX = 256, 512                # fused qkv kernel: seq tile, hidden(K) tile
_TQ, _TKV = 256, 1024               # attention q tile / kv tile


def _tile(dim: int, target: int, align: int = 1) -> int:
    """Largest tile <= target that divides `dim` and is a multiple of `align`.

    Falls back to the full extent (always legal w.r.t. the (8,128) block rule)
    if no aligned divisor exists."""
    if dim <= target:
        return dim
    t = (target // align) * align
    while t >= align:
        if dim % t == 0:
            return t
        t -= align
    return dim


def _vmem_limit_bytes() -> int:
    """Generation-aware scoped-VMEM limit: ~75% of physical VMEM, clamped.

    ~96 MiB on v5e/v6e (128 MiB physical), ~48 MiB on v7x (64 MiB physical),
    conservative 48 MiB when the query is unavailable."""
    cap = 64 * 1024 * 1024
    try:
        cap = int(getattr(pltpu.get_tpu_info(), "vmem_capacity_bytes", cap))
    except Exception:
        cap = 64 * 1024 * 1024
    return int(max(32 * 1024 * 1024, min(cap * 3 // 4, 112 * 1024 * 1024)))


# ----------------------------------------------------------------------------
# ROPE position-embedding table (matches ROPEEmbedding.create_embedding)
# ----------------------------------------------------------------------------
def make_pos_emb(max_token: int, dim: int, theta: int) -> jnp.ndarray:
    t = jnp.arange(dim // 2)
    t = jnp.repeat(t, 2)                                  # (dim,)
    t = -t * 2.0 / dim
    t = jnp.power(jnp.float32(theta), t)                  # (dim,)
    idx = jnp.arange(max_token, dtype=jnp.float32)        # (max_token,)
    m = jnp.einsum("i,j->ij", t, idx)                     # (dim, max_token)
    cos_m = jnp.cos(m)
    sin_m = jnp.sin(m)
    sign = jnp.where(jnp.arange(dim)[:, None] % 2 == 0, -1.0, 1.0)
    sin_m = sin_m * sign                                  # sin_matrix[0::2] *= -1
    pe = jnp.concatenate([cos_m, sin_m], axis=0)          # (2*dim, max_token)
    return pe.T                                           # (max_token, 2*dim)


def _swap_pairs_last(a):
    """Swap adjacent element pairs along the last axis: (x0,x1,x2,x3)->(x1,x0,x3,x2)."""
    shape = a.shape
    return a.reshape(*shape[:-1], shape[-1] // 2, 2)[..., ::-1].reshape(shape)


# ----------------------------------------------------------------------------
# Fused QKV projection + RoPE + 1/sqrt(D) + bf16 cast.
#   acc = x @ [W_qkv | W_qk_pairswapped]   (f32 accumulation over bf16 operands)
#   q/k columns:  out = (proj * cos + proj_swapped * sin)   (scale folded in cos/sin)
#   Emits q, k, v as separate lane-dense bf16 outputs -> no f32 qkv HBM round trip,
#   no separate rope kernel, no activation pair-swap pass.
# ----------------------------------------------------------------------------
def _qkv_rope_kernel(x_ref, w_ref, b_ref, cos_ref, sin_ref,
                     q_ref, k_ref, v_ref, acc_ref, *, qd, kd, n_out):
    k_step = pl.program_id(2)

    @pl.when(k_step == 0)
    def _():
        acc_ref[...] = jnp.zeros(acc_ref.shape, acc_ref.dtype)

    acc_ref[...] += jnp.dot(x_ref[0], w_ref[...],
                            preferred_element_type=jnp.float32)

    @pl.when(k_step == pl.num_programs(2) - 1)
    def _():
        acc = acc_ref[...] + b_ref[...]            # (ts, n_ext) f32, bias broadcast
        qk = acc[:, :qd + kd]                      # projected q|k columns
        qk_sw = acc[:, n_out:]                     # same, in-head pairs swapped
        roped = qk * cos_ref[...] + qk_sw * sin_ref[...]
        q_ref[0] = roped[:, :qd].astype(q_ref.dtype)
        k_ref[0] = roped[:, qd:].astype(k_ref.dtype)
        v_ref[0] = acc[:, qd + kd:n_out].astype(v_ref.dtype)


def fused_qkv_rope(x, w_ext, b_ext, cos_qk, sin_qk, *, qd, kd):
    # x: (B, S, K) bf16, w_ext: (K, N+qd+kd) bf16, b_ext: (1, N+qd+kd) f32,
    # cos_qk/sin_qk: (S, qd+kd) bf16  ->  q (B,S,qd), k (B,S,kd), v (B,S,kd) bf16
    B, S, K = x.shape
    n_ext = w_ext.shape[1]
    n_out = qd + 2 * kd
    ts = _tile(S, _TS, 8)
    tk = _tile(K, _TKX, 128)
    kernel = functools.partial(_qkv_rope_kernel, qd=qd, kd=kd, n_out=n_out)
    return pl.pallas_call(
        kernel,
        out_shape=(jax.ShapeDtypeStruct((B, S, qd), jnp.bfloat16),
                   jax.ShapeDtypeStruct((B, S, kd), jnp.bfloat16),
                   jax.ShapeDtypeStruct((B, S, kd), jnp.bfloat16)),
        grid=(B, S // ts, K // tk),
        in_specs=[
            pl.BlockSpec((1, ts, tk), lambda b, s, k: (b, s, k)),
            pl.BlockSpec((tk, n_ext), lambda b, s, k: (k, 0)),
            pl.BlockSpec((1, n_ext), lambda b, s, k: (0, 0)),
            pl.BlockSpec((ts, qd + kd), lambda b, s, k: (s, 0)),
            pl.BlockSpec((ts, qd + kd), lambda b, s, k: (s, 0)),
        ],
        out_specs=[
            pl.BlockSpec((1, ts, qd), lambda b, s, k: (b, s, 0)),
            pl.BlockSpec((1, ts, kd), lambda b, s, k: (b, s, 0)),
            pl.BlockSpec((1, ts, kd), lambda b, s, k: (b, s, 0)),
        ],
        scratch_shapes=[pltpu.VMEM((ts, n_ext), jnp.float32)],
        compiler_params=pltpu.CompilerParams(
            dimension_semantics=("parallel", "parallel", "arbitrary"),
            vmem_limit_bytes=_vmem_limit_bytes(),
        ),
    )(x, w_ext, b_ext, cos_qk, sin_qk)


# ----------------------------------------------------------------------------
# Flash-style MQA/GQA attention, grouped by KV head.
# q: (B, S, Hq*D) bf16 (rope'd, pre-scaled), k/v: (B, S, KVh*D) bf16 (rope'd).
# Grid (B, q_tiles, kv_tiles); KV axis is the reduction ("arbitrary") axis.
# ----------------------------------------------------------------------------
def _mqa_flash_kernel(q_ref, k_ref, v_ref, o_ref,
                      q_scr, m_scr, l_scr, acc_scr,
                      *, kv_head, ratio, head_dim, tq):
    ki = pl.program_id(2)
    D = head_dim

    # Repack the q tile ONCE per q tile: (tq, Hq*D) -> (kv_head, ratio*tq, D),
    # so each KV step sees one big-M matmul per KV head (fills the MXU and
    # amortizes result-FIFO drains) instead of q_head tiny ones.
    @pl.when(ki == 0)
    def _():
        q_tile = q_ref[0]                                   # (tq, Hq*D) bf16
        for h in range(kv_head * ratio):
            g, r = h // ratio, h % ratio
            q_scr[g, r * tq:(r + 1) * tq, :] = q_tile[:, h * D:(h + 1) * D]

    k_tile = k_ref[0]                                       # (tk, KVh*D) bf16
    v_tile = v_ref[0]                                       # (tk, KVh*D) bf16

    # kv_head is small by construction (that is the point of MQA/GQA), so a
    # static Python loop keeps per-iteration code large and trip count tiny.
    # TODO(synk): optional attention_mask (default None in the module) is not plumbed in.
    for g in range(kv_head):
        qg = q_scr[g]                                       # (G, D)  bf16
        kg = k_tile[:, g * D:(g + 1) * D]                   # (tk, D) bf16
        vg = v_tile[:, g * D:(g + 1) * D]                   # (tk, D) bf16

        s = lax.dot_general(qg, kg, (((1,), (1,)), ((), ())),
                            preferred_element_type=jnp.float32)   # (G, tk) f32
        m_blk = jnp.max(s, axis=-1, keepdims=True)                # (G, 1)

        @pl.when(ki == 0)
        def _():
            # First KV step: write stats/acc directly (no dead -inf rescale RMW).
            p = jnp.exp(s - m_blk)
            m_scr[:, g:g + 1] = m_blk
            l_scr[:, g:g + 1] = jnp.sum(p, axis=-1, keepdims=True)
            acc_scr[g] = jnp.dot(p.astype(jnp.bfloat16), vg,
                                 preferred_element_type=jnp.float32)

        @pl.when(ki > 0)
        def _():
            m_prev = m_scr[:, g:g + 1]
            m_new = jnp.maximum(m_prev, m_blk)
            alpha = jnp.exp(m_prev - m_new)                       # (G, 1)
            p = jnp.exp(s - m_new)                                # (G, tk)
            l_scr[:, g:g + 1] = alpha * l_scr[:, g:g + 1] + jnp.sum(
                p, axis=-1, keepdims=True)
            m_scr[:, g:g + 1] = m_new
            acc_scr[g] = alpha * acc_scr[g] + jnp.dot(
                p.astype(jnp.bfloat16), vg, preferred_element_type=jnp.float32)

    @pl.when(ki == pl.num_programs(2) - 1)
    def _():
        # Normalize and unpack back to the lane-dense (tq, Hq*D) layout.  One
        # per-head masked-lane store, once per q tile (not per KV step).
        for g in range(kv_head):
            # approx reciprocal runs on the EUP slot; ~1e-3 relative error in the
            # softmax normalization, well inside the bf16-pipeline tolerance.
            inv = pl.reciprocal(l_scr[:, g:g + 1], approx=True)   # (G, 1)
            out = (acc_scr[g] * inv).astype(o_ref.dtype)          # (G, D)
            for r in range(ratio):
                h = g * ratio + r
                o_ref[0, :, h * D:(h + 1) * D] = out[r * tq:(r + 1) * tq, :]


def mqa_flash_attention(q, k, v, *, q_head, kv_head, head_dim):
    B, S, qd = q.shape
    kd = k.shape[-1]
    D = head_dim
    ratio = q_head // kv_head
    # B and the q-tile axis are "parallel": with B >= 2 (or S // tq >= 2) both
    # v7x TensorCores get sharded grid steps.
    tq = _tile(S, _TQ, 8)
    tkv = _tile(S, _TKV, 8)        # KV blocks are cheap in MQA -> larger tile,
    G = ratio * tq                 # fewer KV steps / less acc-rescale traffic.
    kernel = functools.partial(_mqa_flash_kernel, kv_head=kv_head, ratio=ratio,
                               head_dim=D, tq=tq)
    return pl.pallas_call(
        kernel,
        out_shape=jax.ShapeDtypeStruct((B, S, qd), jnp.bfloat16),
        grid=(B, S // tq, S // tkv),
        in_specs=[
            pl.BlockSpec((1, tq, qd), lambda b, qi, ki: (b, qi, 0)),
            pl.BlockSpec((1, tkv, kd), lambda b, qi, ki: (b, ki, 0)),
            pl.BlockSpec((1, tkv, kd), lambda b, qi, ki: (b, ki, 0)),
        ],
        out_specs=pl.BlockSpec((1, tq, qd), lambda b, qi, ki: (b, qi, 0)),
        scratch_shapes=[
            pltpu.VMEM((kv_head, G, D), jnp.bfloat16),   # repacked q (per KV head)
            pltpu.VMEM((G, kv_head), jnp.float32),       # running max (lane-dense)
            pltpu.VMEM((G, kv_head), jnp.float32),       # running sum (lane-dense)
            pltpu.VMEM((kv_head, G, D), jnp.float32),    # output accumulator
        ],
        compiler_params=pltpu.CompilerParams(
            dimension_semantics=("parallel", "parallel", "arbitrary"),
            vmem_limit_bytes=_vmem_limit_bytes(),
        ),
    )(q, k, v)


# ----------------------------------------------------------------------------
# Tiled Pallas linear (output projection): y = x @ w + b
# bf16 operands (cast once in the wrapper), f32 accumulation.
# ----------------------------------------------------------------------------
def _linear_kernel(x_ref, w_ref, b_ref, o_ref, acc_ref):
    @pl.when(pl.program_id(2) == 0)
    def _():
        acc_ref[...] = jnp.zeros(acc_ref.shape, acc_ref.dtype)

    acc_ref[...] += jnp.dot(x_ref[...], w_ref[...],
                            preferred_element_type=jnp.float32)

    @pl.when(pl.program_id(2) == pl.num_programs(2) - 1)
    def _():
        o_ref[...] = (acc_ref[...] + b_ref[...]).astype(o_ref.dtype)


def pallas_linear(x, w, b, *, out_dtype=jnp.float32):
    # x: (M, K) bf16, w: (K, N) bf16, b: (1, N) f32  ->  (M, N) out_dtype
    M, K = x.shape
    N = w.shape[1]
    tm = _tile(M, _TM, 8)
    tn = _tile(N, _TN, 128)
    tk = _tile(K, _TK, 128)
    return pl.pallas_call(
        _linear_kernel,
        out_shape=jax.ShapeDtypeStruct((M, N), out_dtype),
        grid=(M // tm, N // tn, K // tk),
        in_specs=[
            pl.BlockSpec((tm, tk), lambda i, j, k: (i, k)),
            pl.BlockSpec((tk, tn), lambda i, j, k: (k, j)),
            pl.BlockSpec((1, tn), lambda i, j, k: (0, j)),
        ],
        out_specs=pl.BlockSpec((tm, tn), lambda i, j, k: (i, j)),
        scratch_shapes=[pltpu.VMEM((tm, tn), jnp.float32)],
        compiler_params=pltpu.CompilerParams(
            dimension_semantics=("parallel", "parallel", "arbitrary"),
            vmem_limit_bytes=_vmem_limit_bytes(),
        ),
    )(x, w, b)


# ----------------------------------------------------------------------------
# Full forward pass.  Glue / one-time weight prep in plain JAX, hot paths in
# Pallas.  Everything stays in the lane-dense (B, S, heads*head_dim) layout.
# ----------------------------------------------------------------------------
def multi_query_attention_forward(x, params, pos_emb, head_dim, q_head, kv_head):
    B, S, H = x.shape
    D = head_dim
    assert q_head % kv_head == 0, "q_head must be an integer multiple of kv_head"
    qd, kd = q_head * D, kv_head * D
    scaler = 1.0 / math.sqrt(D)

    # --- one-time parameter prep (cache alongside params in real use) ---
    w_qkv = params["w_qkv"]
    b_qkv = params["b_qkv"]
    # RoPE's flip_for_sin of (x @ W + b) == x @ W_colswapped + b_colswapped, so
    # the interleaved pair swap is moved onto the (tiny) weight matrix once and
    # never touches activations: no in-kernel lane swizzle, no extra HBM pass.
    w_ext = jnp.concatenate(
        [w_qkv, _swap_pairs_last(w_qkv[:, :qd + kd])], axis=1).astype(jnp.bfloat16)
    b_ext = jnp.concatenate(
        [b_qkv, _swap_pairs_last(b_qkv[:, :qd + kd])], axis=1).astype(jnp.float32)
    w_o = params["w_o"].astype(jnp.bfloat16)
    b_o = params["b_o"].astype(jnp.float32)

    # cos/sin tables tiled per head once at setup (streamed as (ts, qd+kd) bf16
    # blocks -- small next to the matmul accumulator); 1/sqrt(D) is folded into
    # the q-head columns and the interleaved sign is already baked into sin.
    cos = pos_emb[:S, :D]
    sin = pos_emb[:S, D:]
    cos_qk = jnp.concatenate([jnp.tile(cos * scaler, (1, q_head)),
                              jnp.tile(cos, (1, kv_head))], axis=1).astype(jnp.bfloat16)
    sin_qk = jnp.concatenate([jnp.tile(sin * scaler, (1, q_head)),
                              jnp.tile(sin, (1, kv_head))], axis=1).astype(jnp.bfloat16)

    # --- fused QKV projection + RoPE + scale -> lane-dense bf16 q/k/v ---
    q, k, v = fused_qkv_rope(x.astype(jnp.bfloat16), w_ext, b_ext, cos_qk, sin_qk,
                             qd=qd, kd=kd)

    # --- flash attention (online softmax, grouped per KV head) ---
    attn = mqa_flash_attention(q, k, v, q_head=q_head, kv_head=kv_head,
                               head_dim=D)                   # (B, S, Hq*D) bf16

    # --- output projection ---
    out = pallas_linear(attn.reshape(B * S, qd), w_o, b_o, out_dtype=jnp.float32)
    return out.reshape(B, S, H)


# ----------------------------------------------------------------------------
# Pure-JAX f32 reference (mirrors the PyTorch module exactly) for validation
# ----------------------------------------------------------------------------
def _rope_ref(x, pos_emb):
    B, H, S, D = x.shape
    xf = x.reshape(B, H, -1, 2)[..., ::-1].reshape(B, H, S, D)
    t = jnp.concatenate([x, xf], axis=-1) * pos_emb[:S][None, None]
    return t[..., :D] + t[..., D:]


def mqa_ref(x, params, pos_emb, head_dim, q_head, kv_head):
    B, S, Hd = x.shape
    qkv = x @ params["w_qkv"] + params["b_qkv"][0]
    qd, kd = q_head * head_dim, kv_head * head_dim
    q = qkv[..., :qd].reshape(B, S, q_head, head_dim)
    k = qkv[..., qd:qd + kd].reshape(B, S, kv_head, head_dim)
    v = qkv[..., qd + kd:].reshape(B, S, kv_head, head_dim)
    if q_head != kv_head:
        r = q_head // kv_head
        k = jnp.repeat(k, r, axis=2)
        v = jnp.repeat(v, r, axis=2)
    q, k, v = (t.transpose(0, 2, 1, 3) for t in (q, k, v))
    q = _rope_ref(q, pos_emb)
    k = _rope_ref(k, pos_emb)
    s = jnp.einsum("bhqd,bhkd->bhqk", q, k) / math.sqrt(head_dim)
    p = jax.nn.softmax(s, axis=-1)
    o = jnp.einsum("bhqk,bhkd->bhqd", p, v)
    o = o.transpose(0, 2, 1, 3).reshape(B, S, Hd)
    return o @ params["w_o"] + params["b_o"][0]


if __name__ == "__main__":
    batch, seq, hidden = 2, 8, 32
    head_dim, q_head, kv_head = 8, 4, 2        # hidden == q_head * head_dim
    max_token, theta = 16, 10000

    key = jax.random.PRNGKey(0)
    k1, k2, k3, k4, k5 = jax.random.split(key, 5)
    out_qkv = (q_head + 2 * kv_head) * head_dim
    params = {
        "w_qkv": 0.05 * jax.random.normal(k1, (hidden, out_qkv), jnp.float32),
        "b_qkv": 0.01 * jax.random.normal(k2, (1, out_qkv), jnp.float32),
        "w_o": 0.05 * jax.random.normal(k3, (q_head * head_dim, hidden), jnp.float32),
        "b_o": 0.01 * jax.random.normal(k4, (1, hidden), jnp.float32),
    }
    x = jax.random.normal(k5, (batch, seq, hidden), jnp.float32)
    pos_emb = make_pos_emb(max_token, head_dim, theta)

    out = multi_query_attention_forward(x, params, pos_emb, head_dim, q_head, kv_head)
    jax.block_until_ready(out)

    ref = mqa_ref(x, params, pos_emb, head_dim, q_head, kv_head)
    assert out.shape == (batch, seq, hidden)
    # bf16 activations/weights + approx reciprocal vs. the f32 reference:
    # compare with a correspondingly loose tolerance.
    err = float(jnp.max(jnp.abs(out - ref)))
    assert err < 3e-2, err

    print("KERNEL_OK")
</pallas_src>

<mosaic_0001>
module attributes {stable_mosaic.version = 11 : i64} {
  func.func @_qkv_rope_kernel(%arg0: i32, %arg1: i32, %arg2: i32, %arg3: memref<1x8x32xbf16, #tpu.memory_space<vmem>>, %arg4: memref<32x112xbf16, #tpu.memory_space<vmem>>, %arg5: memref<1x112xf32, #tpu.memory_space<vmem>>, %arg6: memref<8x48xbf16, #tpu.memory_space<vmem>>, %arg7: memref<8x48xbf16, #tpu.memory_space<vmem>>, %arg8: memref<1x8x32xbf16, #tpu.memory_space<vmem>>, %arg9: memref<1x8x16xbf16, #tpu.memory_space<vmem>>, %arg10: memref<1x8x16xbf16, #tpu.memory_space<vmem>>, %arg11: memref<8x112xf32, #tpu.memory_space<vmem>>) attributes {dimension_semantics = [#tpu.dimension_semantics<parallel>, #tpu.dimension_semantics<parallel>, #tpu.dimension_semantics<arbitrary>], iteration_bounds = array<i64: 2, 1, 1>, scalar_prefetch = 0 : i64, scratch_operands = 1 : i64, tpu.core_type = #tpu.core_type<tc>, window_params = [{transform_indices = @transform_0, window_bounds = array<i64: 1, 8, 32>}, {transform_indices = @transform_1, window_bounds = array<i64: 32, 112>}, {pipeline_mode = #tpu.pipeline_mode<synchronous>, transform_indices = @transform_2, window_bounds = array<i64: 1, 112>}, {transform_indices = @transform_3, window_bounds = array<i64: 8, 48>}, {transform_indices = @transform_4, window_bounds = array<i64: 8, 48>}, {transform_indices = @transform_5, window_bounds = array<i64: 1, 8, 32>}, {transform_indices = @transform_6, window_bounds = array<i64: 1, 8, 16>}, {transform_indices = @transform_7, window_bounds = array<i64: 1, 8, 16>}]} {
    %c0_i32 = arith.constant 0 : i32
    %0 = arith.cmpi eq, %arg2, %c0_i32 : i32
    %1 = arith.extui %0 : i1 to i32
    %c0_i32_0 = arith.constant 0 : i32
    %2 = arith.cmpi ne, %1, %c0_i32_0 : i32
    scf.if %2 {
      %cst_11 = arith.constant 0.000000e+00 : f32
      %13 = vector.broadcast %cst_11 : f32 to vector<8x112xf32>
      %c0_12 = arith.constant 0 : index
      %c0_13 = arith.constant 0 : index
      %14 = vector.load %arg11[%c0_12, %c0_13] : memref<8x112xf32, #tpu.memory_space<vmem>>, vector<8x112xf32>
      tpu.vector_store %arg11[%c0_12, %c0_13], %13 {strides = array<i32>} : memref<8x112xf32, #tpu.memory_space<vmem>>, vector<8x112xf32>,
    } else {
    }
    %c0 = arith.constant 0 : index
    %c0_1 = arith.constant 0 : index
    %3 = vector.load %arg11[%c0, %c0_1] : memref<8x112xf32, #tpu.memory_space<vmem>>, vector<8x112xf32>
    %c0_2 = arith.constant 0 : index
    %c0_3 = arith.constant 0 : index
    %c0_4 = arith.constant 0 : index
    %4 = vector.load %arg3[%c0_2, %c0_3, %c0_4] : memref<1x8x32xbf16, #tpu.memory_space<vmem>>, vector<1x8x32xbf16>
    %5 = vector.shape_cast %4 : vector<1x8x32xbf16> to vector<8x32xbf16>
    %c0_5 = arith.constant 0 : index
    %c0_6 = arith.constant 0 : index
    %6 = vector.load %arg4[%c0_5, %c0_6] : memref<32x112xbf16, #tpu.memory_space<vmem>>, vector<32x112xbf16>
    %cst = arith.constant dense<0.000000e+00> : vector<8x112xf32>
    %7 = tpu.matmul %5, %6, %cst {dimension_numbers = #tpu.dot_dimension_numbers<[1], [0], [0], [1], [0, 0, 1, 1], [], []>} : vector<8x32xbf16>, vector<32x112xbf16>, vector<8x112xf32> -> vector<8x112xf32>
    %8 = arith.addf %3, %7 : vector<8x112xf32>
    %c0_7 = arith.constant 0 : index
    %c0_8 = arith.constant 0 : index
    %9 = vector.load %arg11[%c0_7, %c0_8] : memref<8x112xf32, #tpu.memory_space<vmem>>, vector<8x112xf32>
    tpu.vector_store %arg11[%c0_7, %c0_8], %8 {strides = array<i32>} : memref<8x112xf32, #tpu.memory_space<vmem>>, vector<8x112xf32>,
    %c0_i32_9 = arith.constant 0 : i32
    %10 = arith.cmpi eq, %arg2, %c0_i32_9 : i32
    %11 = arith.extui %10 : i1 to i32
    %c0_i32_10 = arith.constant 0 : i32
    %12 = arith.cmpi ne, %11, %c0_i32_10 : i32
    scf.if %12 {
      %c0_11 = arith.constant 0 : index
      %c0_12 = arith.constant 0 : index
      %13 = vector.load %arg11[%c0_11, %c0_12] : memref<8x112xf32, #tpu.memory_space<vmem>>, vector<8x112xf32>
      %c0_13 = arith.constant 0 : index
      %c0_14 = arith.constant 0 : index
      %14 = vector.load %arg5[%c0_13, %c0_14] : memref<1x112xf32, #tpu.memory_space<vmem>>, vector<1x112xf32>
      %15 = vector.broadcast %14 : vector<1x112xf32> to vector<8x112xf32>
      %16 = arith.addf %13, %15 : vector<8x112xf32>
      %17 = vector.extract_strided_slice %16 {offsets = [0, 0], sizes = [8, 48], strides = [1, 1]} : vector<8x112xf32> to vector<8x48xf32>
      %18 = vector.extract_strided_slice %16 {offsets = [0, 64], sizes = [8, 48], strides = [1, 1]} : vector<8x112xf32> to vector<8x48xf32>
      %c0_15 = arith.constant 0 : index
      %c0_16 = arith.constant 0 : index
      %19 = vector.load %arg6[%c0_15, %c0_16] : memref<8x48xbf16, #tpu.memory_space<vmem>>, vector<8x48xbf16>
      %20 = arith.extf %19 : vector<8x48xbf16> to vector<8x48xf32>
      %21 = arith.mulf %17, %20 : vector<8x48xf32>
      %c0_17 = arith.constant 0 : index
      %c0_18 = arith.constant 0 : index
      %22 = vector.load %arg7[%c0_17, %c0_18] : memref<8x48xbf16, #tpu.memory_space<vmem>>, vector<8x48xbf16>
      %23 = arith.extf %22 : vector<8x48xbf16> to vector<8x48xf32>
      %24 = arith.mulf %18, %23 : vector<8x48xf32>
      %25 = arith.addf %21, %24 : vector<8x48xf32>
      %26 = vector.extract_strided_slice %25 {offsets = [0, 0], sizes = [8, 32], strides = [1, 1]} : vector<8x48xf32> to vector<8x32xf32>
      %27 = arith.truncf %26 : vector<8x32xf32> to vector<8x32xbf16>
      %c0_19 = arith.constant 0 : index
      %c0_20 = arith.constant 0 : index
      %c0_21 = arith.constant 0 : index
      %28 = vector.load %arg8[%c0_19, %c0_20, %c0_21] : memref<1x8x32xbf16, #tpu.memory_space<vmem>>, vector<1x8x32xbf16>
      %29 = vector.shape_cast %28 : vector<1x8x32xbf16> to vector<8x32xbf16>
      %30 = vector.shape_cast %27 : vector<8x32xbf16> to vector<1x8x32xbf16>
      tpu.vector_store %arg8[%c0_19, %c0_20, %c0_21], %30 {strides = array<i32>} : memref<1x8x32xbf16, #tpu.memory_space<vmem>>, vector<1x8x32xbf16>,
      %31 = vector.extract_strided_slice %25 {offsets = [0, 32], sizes = [8, 16], strides = [1, 1]} : vector<8x48xf32> to vector<8x16xf32>
      %32 = arith.truncf %31 : vector<8x16xf32> to vector<8x16xbf16>
      %c0_22 = arith.constant 0 : index
      %c0_23 = arith.constant 0 : index
      %c0_24 = arith.constant 0 : index
      %33 = vector.load %arg9[%c0_22, %c0_23, %c0_24] : memref<1x8x16xbf16, #tpu.memory_space<vmem>>, vector<1x8x16xbf16>
      %34 = vector.shape_cast %33 : vector<1x8x16xbf16> to vector<8x16xbf16>
      %35 = vector.shape_cast %32 : vector<8x16xbf16> to vector<1x8x16xbf16>
      tpu.vector_store %arg9[%c0_22, %c0_23, %c0_24], %35 {strides = array<i32>} : memref<1x8x16xbf16, #tpu.memory_space<vmem>>, vector<1x8x16xbf16>,
      %36 = vector.extract_strided_slice %16 {offsets = [0, 48], sizes = [8, 16], strides = [1, 1]} : vector<8x112xf32> to vector<8x16xf32>
      %37 = arith.truncf %36 : vector<8x16xf32> to vector<8x16xbf16>
      %c0_25 = arith.constant 0 : index
      %c0_26 = arith.constant 0 : index
      %c0_27 = arith.constant 0 : index
      %38 = vector.load %arg10[%c0_25, %c0_26, %c0_27] : memref<1x8x16xbf16, #tpu.memory_space<vmem>>, vector<1x8x16xbf16>
      %39 = vector.shape_cast %38 : vector<1x8x16xbf16> to vector<8x16xbf16>
      %40 = vector.shape_cast %37 : vector<8x16xbf16> to vector<1x8x16xbf16>
      tpu.vector_store %arg10[%c0_25, %c0_26, %c0_27], %40 {strides = array<i32>} : memref<1x8x16xbf16, #tpu.memory_space<vmem>>, vector<1x8x16xbf16>,
    } else {
    }
    return
  }
  func.func @transform_0(%arg0: i32, %arg1: i32, %arg2: i32) -> (i32, i32, i32) {
    %c0_i32 = arith.constant 0 : i32
    return %arg0, %arg1, %arg2 : i32, i32, i32
  }
  func.func @transform_1(%arg0: i32, %arg1: i32, %arg2: i32) -> (i32, i32) {
    %c0_i32 = arith.constant 0 : i32
    %c0_i32_0 = arith.constant 0 : i32
    return %arg2, %c0_i32 : i32, i32
  }
  func.func @transform_2(%arg0: i32, %arg1: i32, %arg2: i32) -> (i32, i32) {
    %c0_i32 = arith.constant 0 : i32
    %c0_i32_0 = arith.constant 0 : i32
    %c0_i32_1 = arith.constant 0 : i32
    return %c0_i32, %c0_i32_0 : i32, i32
  }
  func.func @transform_3(%arg0: i32, %arg1: i32, %arg2: i32) -> (i32, i32) {
    %c0_i32 = arith.constant 0 : i32
    %c0_i32_0 = arith.constant 0 : i32
    return %arg1, %c0_i32 : i32, i32
  }
  func.func @transform_4(%arg0: i32, %arg1: i32, %arg2: i32) -> (i32, i32) {
    %c0_i32 = arith.constant 0 : i32
    %c0_i32_0 = arith.constant 0 : i32
    return %arg1, %c0_i32 : i32, i32
  }
  func.func @transform_5(%arg0: i32, %arg1: i32, %arg2: i32) -> (i32, i32, i32) {
    %c0_i32 = arith.constant 0 : i32
    %c0_i32_0 = arith.constant 0 : i32
    return %arg0, %arg1, %c0_i32 : i32, i32, i32
  }
  func.func @transform_6(%arg0: i32, %arg1: i32, %arg2: i32) -> (i32, i32, i32) {
    %c0_i32 = arith.constant 0 : i32
    %c0_i32_0 = arith.constant 0 : i32
    return %arg0, %arg1, %c0_i32 : i32, i32, i32
  }
  func.func @transform_7(%arg0: i32, %arg1: i32, %arg2: i32) -> (i32, i32, i32) {
    %c0_i32 = arith.constant 0 : i32
    %c0_i32_0 = arith.constant 0 : i32
    return %arg0, %arg1, %c0_i32 : i32, i32, i32
  }
}

</mosaic_0001>

<bundles_post_ra>
// kernel: tpu_custom_call.1
= control target key start
LH: loop header
LB: loop body
LE: loop exit
PB: predicated region body
PF: predicated region fallthrough
CT: control target
= control target key end

     0   :  { %s1459_s0 = inlined_call_operand.hbm [shape: bf16[2,8,32], index: 0, kind: input, shape index: {}]   ;;  %s1460_s1 = inlined_call_operand.hbm [shape: bf16[32,112], index: 1, kind: input, shape index: {}]   ;;  %s1461_s2 = inlined_call_operand.vmem [shape: f32[1,112], index: 2, kind: input, shape index: {}]   ;;  %s1462_s3 = inlined_call_operand.vmem [shape: bf16[8,48], index: 3, kind: input, shape index: {}]   ;;  %s1463_s4 = inlined_call_operand.vmem [shape: bf16[8,48], index: 4, kind: input, shape index: {}]   ;;  %s1464_s5 = inlined_call_operand.hbm [shape: bf16[2,8,32], index: 5, kind: output, shape index: {0}]   ;;  %s1465_s6 = inlined_call_operand.hbm [shape: bf16[2,8,16], index: 6, kind: output, shape index: {1}]   ;;  %s1466_s7 = inlined_call_operand.hbm [shape: bf16[2,8,16], index: 7, kind: output, shape index: {2}]  }
   0x1   :  { %1472 = sst [smem:[#allocation17_spill]] %s1460_s1 }
   0x2   :  { %13 = vsyncpa [#allocation4], 0 }
   0x3   :  { %15 = vsyncpa [#allocation4 + $0x1], 0 }
   0x4   :  { %16 = vsyncpa [#allocation7], 0 }
   0x5   :  { %17 = vsyncpa [#allocation5], 0 }
   0x6   :  { %19 = vsyncpa [#allocation5 + $0x1], 0 }
   0x7   :  { %20 = vsyncpa [#allocation10], 0 }
   0x8   :  { %22 = vsyncpa [#allocation10 + $0x1], 0  ;;  %s1153_s24 = smov 0   ;;  %s1155_s25 = smov 0  }
   0x9   :  { %s1157_s26 = smov 0   ;;  %s1159_s27 = smov 0  }
   0xa   :  { %s1161_s28 = smov 0   ;;  %s1163_s29 = smov 0  }
   0xb LB: > { %s1184_s30 = sadd.s32 4294967295, %s1099_s29   ;;  %s1470_s8 = sadd.s32 4294967294, %s1099_s29   ;;  %s1099_s29 = sphi %s1163_s29, %s28_s29   ;;  %s1095_s28 = sphi %s1161_s28, %s1495_s28   ;;  %s1091_s27 = sphi %s1159_s27, %s1494_s27   ;;  %s1087_s26 = sphi %s1157_s26, %s1493_s26   ;;  %s1083_s25 = sphi %s1155_s25, %s1492_s25   ;;  %s1079_s24 = sphi %s1153_s24, %s1491_s24  }
   0xc   : > { %p71_p0 = scmp.ne.s32.totalorder %s1083_s25, %s1079_s24  ;;  %p1467_p1 = scmp.eq.s32.totalorder %s1184_s30, 0 }
   0xd   : > { %p202_p3 = scmp.eq.s32.totalorder %s1470_s8, 1  ;;  %p763_p5 = scmp.ge.s32.totalorder %s1099_s29, 1 }
   0xe   : > { %p1195_p4 = por %p1467_p1, %p71_p0  ;;  %p265_p7 = scmp.lt.s32.totalorder %s1099_s29, 3 }
   0xf   : > { %p1200_p6 = por %p202_p3, %p71_p0  ;;  %s1101_s12 = smov [#allocation6]  }
  0x10   : > { %s1473_s9 = scalar_select %p1195_p4, 1, 0 }
  0x11   : > { %s1474_s10 = scalar_select %p1200_p6, 1, 0 }
  0x12   : > { %p1205_p8 = pnand %p763_p5, %p265_p7  ;;  %s280_s13 = sshll.u32 %s1101_s12, 4  ;;  %s281_s13 = int_to_ptr.vmem [resolvable:$true] %s280_s13 }
  0x13   : > { %s47_s15 = sadd.s32 1, %s1095_s28  ;;  %s1477_s1 = sld [smem:[#allocation17_spill]] }
  0x14   : > { %s1475_s11 = scalar_select %p1205_p8, 1, 0 }
  0x15   : > { %p815_p9 = pneg %p1205_p8 }
  0x17   : > { %p1214_p11 = pnand %p815_p9, %p1467_p1 }
  0x19   : > { %s895_s18 = scalar_lea.hbm %s1477_s1, 256  ;;  %p897_p13 = pneg %p1214_p11 }
  0x1a   : > { %p896_p12 = scmp.ne.s32.totalorder %s1477_s1, %s895_s18  ;;  %p902_p5 = scmp.lt.u32.totalorder %s895_s18, %s1477_s1 }
  0x1c   : > { %p898_p0 = pnand %p897_p13, %p896_p12 }
  0x1e   : > { %p899_p3 = pneg %p898_p0 }
  0x20   : > { %p904_p7 = pnand %p902_p5, %p899_p3 }
  0x22   : > { %907 = shalt.err (!%p904_p7)
}
  0x23   : > { %s908_s23 = scalar_lea.vmem %s281_s13, 256  ;;  %p916_p2 = scmp.lt.s32.totalorder %s281_s13, %s281_s13 }
  0x24   : > { %p909_p9 = scmp.ne.s32.totalorder %s281_s13, %s908_s23  ;;  %p917_p6 = scmp.lt.s32.totalorder %s908_s23, %s908_s23 }
  0x26   : > { %p911_p10 = pnand %p909_p9, %p897_p13  ;;  %p918_p4 = por %p917_p6, %p916_p2 }
  0x28   : > { %p912_p1 = pneg %p911_p10 }
  0x2a   : > { %p919_p8 = pnand %p918_p4, %p912_p1 }
  0x2c   : > { %922 = shalt.err (!%p919_p8)
}
  0x2d   : > { %s1102_s12 = smov 64   ;;  %s1103_s16 = smov 4  }
  0x2e   : > { %818 = dma.hbm_to_vmem [thread:$0]  (!%p1214_p11), %s1477_s1, 256, %s281_s13, [#allocation7], %s1102_s12, %s1102_s12, %s1103_s16  }
  0x2f   : > { %p49_p1 = scmp.ge.s32.totalorder %s47_s15, 2  ;;  %s58_s19 = sadd.s32 1, %s1087_s26 }
  0x30   : > { %p65_p2 = scmp.ne.s32.totalorder %s1087_s26, %s1083_s25  ;;  %p66_p4 = scmp.eq.s32.totalorder %s1099_s29, 0 }
  0x31   : > { %s1497_s15 = smov (%p49_p1, %s47_s15), 0  ;;  %p1480_p8 = scmp.eq.s32.totalorder %s1184_s30, 1 }
  0x32   : > { %1478 = sst [smem:[#allocation16_spill]] %s1497_s15  ;;  %p1241_p6 = por %p66_p4, %p65_p2 }
  0x33   : > { %p1247_p10 = por %p1480_p8, %p65_p2  ;;  %s51_s14 = ssub.s32 %s1095_s28, %s1497_s15 }
  0x34   : > { %p834_p12 = scmp.lt.s32.totalorder %s1099_s29, 2  ;;  %p56_p11 = scmp.eq.s32.totalorder %s51_s14, 0 }
  0x35   : > { %s311_s13 = sand.u32 1, %s1087_s26   ;;  %s769_s12 = sshll.u32 %s1095_s28, 6 }
  0x36   : > { %s768_s22 = sshll.u32 %s311_s13, 2  ;;  %s1262_s18 = scalar_lea.hbm %s1459_s0, %s769_s12 }
  0x37   : > { %s1256_s23 = scalar_select %p56_p11, %s1087_s26, %s58_s19  }
  0x38   : > { %s315_s8 = scalar_lea.vmem [#allocation3], %s768_s22  ;;  %p1268_p13 = pnand %p834_p12, %p1241_p6 }
  0x39   : > { %s324_s1 = sshll.u32 %s315_s8, 4  ;;  %s312_s19 = scalar_lea.sflag [#allocation4], %s311_s13  ;;  %s1264_s1 = int_to_ptr.vmem [resolvable:$true] %s324_s1 }
  0x3a   : > { %s923_s15 = scalar_lea.hbm %s1262_s18, 64  ;;  %p925_p3 = pneg %p1268_p13 }
  0x3b   : > { %p924_p0 = scmp.ne.s32.totalorder %s1262_s18, %s923_s15  ;;  %s928_s12 = scalar_lea.hbm %s1459_s0, 128 }
  0x3c   : > { %p929_p9 = scmp.lt.u32.totalorder %s1262_s18, %s1459_s0  ;;  %p930_p1 = scmp.lt.u32.totalorder %s928_s12, %s923_s15 }
  0x3d   : > { %p926_p5 = pnand %p925_p3, %p924_p0  ;;  %p932_p4 = scmp.lt.u32.totalorder %s923_s15, %s1262_s18 }
  0x3e   : > { %p931_p2 = por %p930_p1, %p929_p9 }
  0x3f   : > { %p927_p7 = pneg %p926_p5 }
  0x40   : > { %p933_p6 = por %p932_p4, %p931_p2 }
  0x42   : > { %p934_p8 = pnand %p933_p6, %p927_p7 }
  0x44   : > { %937 = shalt.err (!%p934_p8)
}
  0x45   : > { %s938_s13 = scalar_lea.vmem %s1264_s1, 64  ;;  %s1104_s17 = smov [#allocation3]  }
  0x46   : > { %p939_p12 = scmp.ne.s32.totalorder %s1264_s1, %s938_s13  ;;  %s943_s22 = sshll.u32 %s1104_s17, 4  ;;  %s944_s22 = int_to_ptr.vmem [resolvable:$false] %s943_s22 }
  0x47   : > { %s945_s8 = scalar_lea.vmem %s944_s22, 128  ;;  %p946_p5 = scmp.lt.s32.totalorder %s1264_s1, %s944_s22 }
  0x48   : > { %p941_p11 = pnand %p939_p12, %p925_p3  ;;  %p947_p9 = scmp.lt.s32.totalorder %s945_s8, %s938_s13 }
  0x4a   : > { %p942_p0 = pneg %p941_p11  ;;  %p948_p1 = por %p947_p9, %p946_p5 }
  0x4c   : > { %p949_p2 = pnand %p948_p1, %p942_p0 }
  0x4e   : > { %952 = shalt.err (!%p949_p2)
}
  0x4f   : > { %822 = dma.hbm_to_vmem [thread:$0]  (!%p1268_p13), %s1262_s18, 64, %s1264_s1, %s312_s19  }
  0x50   : > { %p1483_p7 = scmp.ne.s32.totalorder %s1475_s11, 0 }
  0x51   : > { %s1300_s15 = sand.u32 (!%p1483_p7), 1, %s1083_s25   ;;  %p1484_p3 = scmp.ne.s32.totalorder (!%p1483_p7), %s1473_s9, 0 }
  0x52   : > { %333 = sbr.rel (%p1483_p7) target bundleno = 599 (0x257), region = 40  ;;  %s1303_s12 = sshll.u32 (!%p1483_p7), %s1300_s15, 2 }
  0x53   : > { %s336_s20 = scalar_lea.sflag (!%p1483_p7), [#allocation4], %s1300_s15  ;;  %s339_s16 = scalar_lea.vmem (!%p1483_p7), [#allocation3], %s1303_s12 }
  0x59   : > { %1062 = dma.done.wait (%p1484_p3), %s336_s20, 64  }
  0x5a   : > { %1064 = vsyncadd (%p1484_p3), %s336_s20, 4294967232  ;;  %p1485_p13 = scmp.eq.s32.totalorder %s1184_s30, 0 }
  0x5c   : > { %1066 = dma.done.wait (%p1485_p13), [#allocation7], 256   ;;  %p1486_p4 = pmov %p1485_p13 }
  0x5d   : > { %vm406_vm0 = vcmask 916480   ;;  %v1105_v0 = vmov 0.0   ;;  %vm1106_vm1 = vmmov 0   ;;  %v893_v1 = vld [vmem:[#allocation6] sm:$0xff]   ;;  %v894_v2 = vld [vmem:[#allocation6 + $0x8] sm:$0xff]   ;;  %s1107_s9 = smov 64  }
  0x5e   : > { %1068 = vsyncadd (%p1486_p4), [#allocation7], 4294967040  ;;  %407 = vst.msk [vmem:[#allocation2] sm:$0xff] %vm406_vm0, %v1105_v0  ;;  %795 = vmatprep.subr.bf16.mxu0 %v1105_v0  ;;  %799 = vmatprep.mubr.msk.bf16.mxu0 %vm1106_vm1, %v1105_v0  ;;  %v488_v3 = vld [vmem:[%s1463_s4] sm:$0xf]  ;;  %vm426_vm2 = vcmask 261120  }
  0x5f   : > { %796 = vmatpush3.bf16.msra.mxu0 %v893_v1  ;;  %v489_v4 = vunpack.c.l.bf16 %v488_v3  ;;  %v409_v5 = vld [vmem:[%s339_s16] sm:$0xf]  ;;  %v779_v12 = vld [vmem:[%s1461_s2] ss:$0 sm:$0xff]  ;;  %s1327_s17 = sshll.u32 %s1091_s27, 6  ;;  %s377_s22 = scalar_lea.vmem [#allocation8], %s1303_s12 }
  0x60   : > { %797 = vmatprep.subr.bf16.mxu0 %v1105_v0  ;;  %v485_v17 = vld [vmem:[%s1462_s3] sm:$0xf]  ;;  %s544_s8 = sshll.u32 %s377_s22, 4  ;;  %vm501_vm3 = vcmask 257024   ;;  %s1334_s1 = scalar_lea.hbm %s1464_s5, %s1327_s17  ;;  %s1336_s8 = int_to_ptr.vmem [resolvable:$true] %s544_s8 }
  0x61   : > { %491 = vrot.lane.b32.xlu0 %v489_v4, %s1107_s9  ;;  %v486_v18 = vunpack.c.l.bf16 %v485_v17  ;;  %s1108_s11 = smov 96   ;;  %s520_s27 = scalar_lea.sflag [#allocation5], %s1300_s15 }
  0x62   : > { %s1109_s18 = smov [#allocation8]  }
  0x63   : > { %798 = vmatpush3.bf16.msra.mxu0 %v894_v2  ;;  %s957_s14 = sshll.u32 %s1109_s18, 4  ;;  %s958_s14 = int_to_ptr.vmem [resolvable:$false] %s957_s14 }
  0x64   : > { %s959_s19 = scalar_lea.vmem %s958_s14, 128  ;;  %p960_p11 = scmp.lt.s32.totalorder %s1336_s8, %s958_s14 }
  0x65   : > { %v408_v6 = vld [vmem:[#allocation2] sm:$0xff] }
  0x66   : > { %800 = vmatmul.mubr.msk.bf16.vlgmr.msra.gmra.mrb[0].mxu0 %vm426_vm2, %v409_v5 }
  0xd3   : > { %v492_v13 = vpop.permute.xlu0 %491 }
 0x139   : > { %v464_v7 = vpop.f32.mrb[0].mxu0 }
 0x13a   : > { %v470_v8 = vadd.f32 %v464_v7, %v408_v6  ;;  %v801_v9 = vpop.f32.mrb[1].mxu0 }
 0x13b   : > { %v467_v10 = vpop.f32.mrb[2].mxu0 }
 0x13c   : > { %472 = vst.msk [vmem:[#allocation2] sm:$0xff] %vm406_vm0, %v470_v8  ;;  %v802_v11 = vpop.f32.mrb[3].mxu0 }
 0x143   : > { %v476_v14 = vld [vmem:[#allocation2] sm:$0xff] }
 0x144   : > { %v484_v15 = vadd.f32 %v779_v12, %v476_v14 }
 0x146   : > { %v494_v16 = vmul.f32 %v492_v13, %v484_v15  ;;  %v487_v19 = vmul.f32 %v486_v18, %v484_v15 }
 0x148   : > { %496 = vrot.lane.b32.xlu0 %v494_v16, %s1107_s9  ;;  %s953_s9 = scalar_lea.vmem %s1336_s8, 64 }
 0x149   : > { %p954_p6 = scmp.ne.s32.totalorder %s1336_s8, %s953_s9  ;;  %p961_p0 = scmp.lt.s32.totalorder %s959_s19, %s953_s9 }
 0x14b   : > { %p955_p8 = pnand %p954_p6, %p1247_p10  ;;  %p962_p5 = por %p961_p0, %p960_p11 }
 0x14d   : > { %p956_p12 = pneg %p955_p8 }
 0x14f   : > { %p963_p9 = pnand %p962_p5, %p956_p12 }
 0x1ba   : > { %v497_v20 = vpop.permute.xlu0 %496 }
 0x1bb   : > { %v499_v21 = vadd.f32 %v497_v20, %v487_v19 }
 0x1bd   : > { %v500_v22 = vpack.c.bf16 %v499_v21, %v499_v21 }
 0x1bf   : > { %506 = vrot.lane.b32.xlu1 %v500_v22, %s1108_s11  ;;  %502 = vst.msk [vmem:[%s377_s22] sm:$0xf] %vm501_vm3, %v500_v22 }
 0x1c0   : > { %966 = shalt.err (!%p963_p9)
}
 0x1c1   : > { %s967_s15 = scalar_lea.hbm %s1334_s1, 64  ;;  %s971_s20 = scalar_lea.hbm %s1464_s5, 128 }
 0x1c2   : > { %p968_p1 = scmp.ne.s32.totalorder %s1334_s1, %s967_s15  ;;  %p972_p3 = scmp.lt.u32.totalorder %s1334_s1, %s1464_s5 }
 0x1c3   : > { %p973_p13 = scmp.lt.u32.totalorder %s971_s20, %s967_s15  ;;  %p975_p6 = scmp.lt.u32.totalorder %s967_s15, %s1334_s1 }
 0x1c4   : > { %p969_p2 = pnand %p968_p1, %p1247_p10 }
 0x1c5   : > { %p974_p4 = por %p973_p13, %p972_p3 }
 0x1c6   : > { %p970_p7 = pneg %p969_p2 }
 0x1c7   : > { %p976_p8 = por %p975_p6, %p974_p4 }
 0x1c9   : > { %p977_p12 = pnand %p976_p8, %p970_p7 }
 0x1cb   : > { %980 = shalt.err (!%p977_p12)
}
 0x1cc   : > { %809 = dma.vmem_to_hbm [thread:$0]  (%p1247_p10), %s1336_s8, 64, %s1334_s1, %s520_s27   ;;  %v791_v23 = vpack.c.bf16 %v484_v15, %v484_v15  ;;  %vm509_vm4 = vcmask 125952  }
 0x1cd   : > { %s1110_s9 = smov 80   ;;  %s524_s18 = sand.u32 1, %s1184_s30  }
 0x1ce   : > { %515 = vrot.lane.b32.xlu1 %v791_v23, %s1110_s9  ;;  %s384_s14 = scalar_lea.vmem [#allocation9], %s1303_s12  ;;  %s1366_s22 = scalar_lea.hbm %s1465_s6, %s1327_s17 }
 0x1cf   : > { %s558_s19 = sshll.u32 %s384_s14, 4  ;;  %s391_s8 = scalar_lea.vmem [#allocation11], %s1303_s12  ;;  %s1368_s19 = int_to_ptr.vmem [resolvable:$true] %s558_s19 }
 0x1d0   : > { %s1373_s1 = sshll.u32 %s391_s8, 4  ;;  %s1376_s30 = scalar_lea.sflag [#allocation10], %s524_s18  ;;  %s1407_s1 = int_to_ptr.vmem [resolvable:$true] %s1373_s1 }
 0x1d1   : > { %s981_s27 = scalar_lea.vmem %s1368_s19, 64  ;;  %s1111_s20 = smov [#allocation9]  }
 0x1d2   : > { %p982_p11 = scmp.ne.s32.totalorder %s1368_s19, %s981_s27  ;;  %s985_s16 = sshll.u32 %s1111_s20, 4  ;;  %s986_s16 = int_to_ptr.vmem [resolvable:$false] %s985_s16 }
 0x1d3   : > { %s987_s11 = scalar_lea.vmem %s986_s16, 128  ;;  %p988_p9 = scmp.lt.s32.totalorder %s1368_s19, %s986_s16 }
 0x1d4   : > { %p983_p0 = pnand %p982_p11, %p1247_p10  ;;  %p989_p1 = scmp.lt.s32.totalorder %s987_s11, %s981_s27 }
 0x1d6   : > { %p984_p5 = pneg %p983_p0  ;;  %p990_p2 = por %p989_p1, %p988_p9 }
 0x1d8   : > { %p991_p7 = pnand %p990_p2, %p984_p5 }
 0x231   : > { %v507_v24 = vpop.permute.xlu1 %506 }
 0x232   : > { %510 = vst.msk [vmem:[%s384_s14] sm:$0xf] %vm509_vm4, %v507_v24 }
 0x233   : > { %994 = shalt.err (!%p991_p7)
}
 0x234   : > { %s995_s9 = scalar_lea.hbm %s1366_s22, 64  ;;  %s999_s15 = scalar_lea.hbm %s1465_s6, 128 }
 0x235   : > { %p996_p3 = scmp.ne.s32.totalorder %s1366_s22, %s995_s9  ;;  %p1000_p6 = scmp.lt.u32.totalorder %s1366_s22, %s1465_s6 }
 0x236   : > { %p1001_p8 = scmp.lt.u32.totalorder %s999_s15, %s995_s9  ;;  %p1003_p11 = scmp.lt.u32.totalorder %s995_s9, %s1366_s22 }
 0x237   : > { %p997_p13 = pnand %p996_p3, %p1247_p10 }
 0x238   : > { %p1002_p12 = por %p1001_p8, %p1000_p6 }
 0x239   : > { %p998_p4 = pneg %p997_p13 }
 0x23a   : > { %p1004_p0 = por %p1003_p11, %p1002_p12 }
 0x23c   : > { %p1005_p5 = pnand %p1004_p0, %p998_p4 }
 0x23e   : > { %1008 = shalt.err (!%p1005_p5)
}
 0x23f   : > { %810 = dma.vmem_to_hbm [thread:$0]  (%p1247_p10), %s1368_s19, 64, %s1366_s22, %s1376_s30  }
 0x240   : > { %s1404_s11 = scalar_lea.hbm %s1466_s7, %s1327_s17  ;;  %v516_v25 = vpop.permute.xlu1 %515  ;;  %s1009_s9 = scalar_lea.vmem %s1407_s1, 64 }
 0x241   : > { %518 = vst.msk [vmem:[%s391_s8] sm:$0xf] %vm509_vm4, %v516_v25  ;;  %p1010_p9 = scmp.ne.s32.totalorder %s1407_s1, %s1009_s9  ;;  %s1112_s19 = smov [#allocation11]  }
 0x242   : > { %s1013_s22 = sshll.u32 %s1112_s19, 4  ;;  %s1014_s22 = int_to_ptr.vmem [resolvable:$false] %s1013_s22 }
 0x243   : > { %p1011_p1 = pnand %p1010_p9, %p1247_p10  ;;  %s1015_s18 = scalar_lea.vmem %s1014_s22, 128 }
 0x244   : > { %p1016_p7 = scmp.lt.s32.totalorder %s1407_s1, %s1014_s22  ;;  %p1017_p3 = scmp.lt.s32.totalorder %s1015_s18, %s1009_s9 }
 0x245   : > { %p1012_p2 = pneg %p1011_p1 }
 0x246   : > { %p1018_p13 = por %p1017_p3, %p1016_p7 }
 0x248   : > { %p1019_p4 = pnand %p1018_p13, %p1012_p2 }
 0x24a   : > { %1022 = shalt.err (!%p1019_p4)
}
 0x24b   : > { %s1023_s12 = scalar_lea.hbm %s1404_s11, 64  ;;  %s1027_s14 = scalar_lea.hbm %s1466_s7, 128 }
 0x24c   : > { %p1024_p6 = scmp.ne.s32.totalorder %s1404_s11, %s1023_s12  ;;  %p1028_p11 = scmp.lt.u32.totalorder %s1404_s11, %s1466_s7 }
 0x24d   : > { %p1029_p0 = scmp.lt.u32.totalorder %s1027_s14, %s1023_s12  ;;  %p1031_p9 = scmp.lt.u32.totalorder %s1023_s12, %s1404_s11 }
 0x24e   : > { %p1025_p8 = pnand %p1024_p6, %p1247_p10 }
 0x24f   : > { %p1030_p5 = por %p1029_p0, %p1028_p11 }
 0x250   : > { %p1026_p12 = pneg %p1025_p8 }
 0x251   : > { %p1032_p1 = por %p1031_p9, %p1030_p5 }
 0x253   : > { %p1033_p2 = pnand %p1032_p1, %p1026_p12 }
 0x255   : > { %1036 = shalt.err (!%p1033_p2)
}
 0x256   : > { %811 = dma.vmem_to_hbm [thread:$0]  (%p1247_p10), %s1407_s1, 64, %s1404_s11, %s1376_s30  }
 0x257 PF: > { %s584_s20 = sand.u32 1, %s1079_s24   ;;  %p1487_p7 = scmp.ne.s32.totalorder %s1474_s10, 0 }
 0x258   : > { %p1488_p3 = scmp.ge.s32.totalorder %s1099_s29, 2  ;;  %s585_s27 = scalar_lea.sflag [#allocation5], %s584_s20 }
 0x25a   : > { %p824_p13 = pnand %p1488_p3, %p1487_p7 }
 0x25c   : > { %1070 = dma.done.wait (!%p824_p13), %s585_s27, 64  }
 0x25d   : > { %1072 = vsyncadd (!%p824_p13), %s585_s27, 4294967232  ;;  %s1489_s16 = sadd.s32 4294967294, %s1099_s29  }
 0x25e   : > { %s593_s9 = sand.u32 1, %s1489_s16  }
 0x25f   : > { %s594_s19 = scalar_lea.sflag [#allocation10], %s593_s9 }
 0x260   : > { %1074 = dma.done.wait (!%p824_p13), %s594_s19, 128  }
 0x261   : > { %1076 = vsyncadd (!%p824_p13), %s594_s19, 4294967168  ;;  %s28_s29 = sadd.s32 1, %s1099_s29   ;;  %s1490_s21 = sld [smem:[#allocation16_spill]] }
 0x262   : > { %p25_p10 = scmp.ge.s32.totalorder %s28_s29, 4   ;;  %s1491_s24 = smov %s1083_s25 }
 0x263   : > { %s1492_s25 = smov %s1087_s26  ;;  %s1493_s26 = smov %s1256_s23 }
 0x264   : > { %s1494_s27 = smov %s1095_s28  ;;  %27 = sbr.rel (!%p25_p10) target bundleno = 11 (0xb), region = 136 }
 0x267   : > { %s1495_s28 = smov %s1490_s21 }
 0x26b   :  { %608 = vsyncpa [#allocation4], 1 }
 0x26c   :  { %610 = vsyncpa [#allocation4 + $0x1], 1 }
 0x26d   :  { %611 = vsyncpa [#allocation7], 1 }
 0x26e   :  { %612 = vsyncpa [#allocation5], 1 }
 0x26f   :  { %614 = vsyncpa [#allocation5 + $0x1], 1 }
 0x270   :  { %615 = vsyncpa [#allocation10], 1 }
 0x271   :  { %617 = vsyncpa [#allocation10 + $0x1], 1 }

</bundles_post_ra>
